<compile_context>
chip_gen: v5e
topology: v5e:2x2
jax: 0.10.0
libtpu: 0.0.40
codegen_flags: <defaults>
</compile_context>

<pallas_src>
import functools

import jax
import jax.numpy as jnp
from jax.experimental import pallas as pl
from jax.experimental.pallas import tpu as pltpu


def _round_up(x, m):
    return ((x + m - 1) // m) * m


def _pad_to(arr, shape):
    pads = [(0, s - d) for d, s in zip(arr.shape, shape)]
    if all(p == (0, 0) for p in pads):
        return arr
    return jnp.pad(arr, pads)


def _vmem_budget_bytes():
    """Per-generation VMEM budget for the resident-weight (fused) scheme."""
    try:
        cap = int(pltpu.get_tpu_info().vmem_capacity_bytes)
    except Exception:
        cap = 64 << 20          # conservative default: v7x per-TensorCore VMEM
    return min(int(cap * 0.6), 48 << 20)


def _resident_spec(block_shape, single_buffer):
    """BlockSpec for a VMEM-resident operand (constant index_map).

    Single-buffered when possible: a block whose index never changes gains
    nothing from double buffering, so this halves its VMEM footprint.
    """
    if single_buffer:
        try:
            return pl.BlockSpec(block_shape, lambda i: (0, 0),
                                pipeline_mode=pl.Buffered(1))
        except TypeError:
            pass        # older BlockSpec signature without pipeline_mode
    return pl.BlockSpec(block_shape, lambda i: (0, 0))


# ----------------------------------------------------------------------------
# Fused whole-MLP kernel: grid tiles only the row axis, all layer weights are
# VMEM-resident, intermediate activations never leave VMEM/vregs.
# ----------------------------------------------------------------------------
def _mlp_fused_kernel(*refs, num_layers, sigmoid_output):
    """refs = (x_ref, w0, b0, w1, b1, ..., o_ref)."""
    x_ref = refs[0]
    o_ref = refs[-1]
    layer_refs = refs[1:-1]

    h = x_ref[...]
    for l in range(num_layers):
        w_ref = layer_refs[2 * l]
        b_ref = layer_refs[2 * l + 1]
        # bf16 operands on the MXU, f32 accumulation.
        y = jnp.dot(h.astype(w_ref.dtype), w_ref[...],
                    preferred_element_type=jnp.float32)
        y = y + b_ref[...].astype(jnp.float32)      # (1, N) broadcast
        if l < num_layers - 1:
            y = jnp.maximum(y, 0.0)
        h = y
    if sigmoid_output:
        h = jax.nn.sigmoid(h)
    o_ref[...] = h.astype(o_ref.dtype)


@functools.partial(jax.jit,
                   static_argnames=("num_layers", "sigmoid_output", "tm",
                                    "single_buffer"))
def _mlp_fused_forward(x2d, params, *, num_layers, sigmoid_output, tm,
                       single_buffer):
    M, K0 = x2d.shape
    n_out = params[-1][0].shape[1]

    in_specs = [pl.BlockSpec((tm, K0), lambda i: (i, 0))]
    flat_args = [x2d]
    weight_bytes = 0
    max_width = K0
    for (w, b) in params:
        Kl, Nl = w.shape
        in_specs.append(_resident_spec((Kl, Nl), single_buffer))
        in_specs.append(_resident_spec((1, Nl), single_buffer))
        flat_args += [w, b]
        weight_bytes += w.size * w.dtype.itemsize + b.size * b.dtype.itemsize
        max_width = max(max_width, Nl)

    itm = x2d.dtype.itemsize
    wbuf = 1 if single_buffer else 2
    vmem_need = (wbuf * weight_bytes
                 + 2 * tm * K0 * itm          # double-buffered input tiles
                 + 2 * tm * n_out * itm       # double-buffered output tiles
                 + 4 * tm * max_width * 4)    # f32 intermediates headroom
    vmem_limit = int(min(max(2 * vmem_need + (4 << 20), 32 << 20), 48 << 20))

    cost = pl.CostEstimate(
        flops=2 * M * sum(w.shape[0] * w.shape[1] for w, _ in params),
        transcendentals=M * n_out if sigmoid_output else 0,
        bytes_accessed=M * K0 * itm + weight_bytes + M * n_out * itm)

    kernel = functools.partial(_mlp_fused_kernel,
                               num_layers=num_layers,
                               sigmoid_output=sigmoid_output)

    return pl.pallas_call(
        kernel,
        out_shape=jax.ShapeDtypeStruct((M, n_out), x2d.dtype),
        grid_spec=pltpu.PrefetchScalarGridSpec(
            num_scalar_prefetch=0,
            grid=(pl.cdiv(M, tm),),           # masked partial last row tile
            in_specs=in_specs,
            out_specs=pl.BlockSpec((tm, n_out), lambda i: (i, 0)),
        ),
        compiler_params=pltpu.CompilerParams(
            dimension_semantics=("parallel",),   # shard row tiles across TCs
            vmem_limit_bytes=vmem_limit,
        ),
        cost_estimate=cost,
    )(*flat_args)


# ----------------------------------------------------------------------------
# Fallback: per-layer M/N/K-tiled linear (+bias, +ReLU/sigmoid) for layers
# whose weights do not fit the resident-VMEM budget.
# ----------------------------------------------------------------------------
def _linear_tiled_kernel(x_ref, w_ref, b_ref, o_ref, acc_ref, *,
                         k_total, tk, relu, sigmoid):
    kk = pl.program_id(2)

    @pl.when(kk == 0)
    def _():
        acc_ref[...] = jnp.zeros_like(acc_ref)

    x_blk = x_ref[...]
    w_blk = w_ref[...]
    if k_total % tk != 0:
        # Zero the out-of-range K region of the partial last K tile so that
        # out-of-bounds garbage never reaches the accumulator.
        koff = kk * tk
        col = jax.lax.broadcasted_iota(jnp.int32, x_blk.shape, 1) + koff
        x_blk = jnp.where(col < k_total, x_blk, 0)
        row = jax.lax.broadcasted_iota(jnp.int32, w_blk.shape, 0) + koff
        w_blk = jnp.where(row < k_total, w_blk, 0)

    acc_ref[...] += jnp.dot(x_blk.astype(w_blk.dtype), w_blk,
                            preferred_element_type=jnp.float32)

    @pl.when(kk == pl.num_programs(2) - 1)
    def _():
        y = acc_ref[...] + b_ref[...].astype(jnp.float32)
        if relu:
            y = jnp.maximum(y, 0.0)
        if sigmoid:
            y = jax.nn.sigmoid(y)
        o_ref[...] = y.astype(o_ref.dtype)


@functools.partial(jax.jit,
                   static_argnames=("relu", "sigmoid", "tm", "tn", "tk"))
def _linear_tiled(x, w, b, *, relu, sigmoid, tm, tn, tk):
    M, K = x.shape
    N = w.shape[1]
    itm = x.dtype.itemsize
    itw = w.dtype.itemsize

    vmem_need = (2 * (tm * tk * itm + tk * tn * itw + tn * itw)
                 + 3 * tm * tn * 4)
    vmem_limit = int(min(max(2 * vmem_need + (4 << 20), 32 << 20), 48 << 20))
    cost = pl.CostEstimate(
        flops=2 * M * K * N,
        transcendentals=M * N if sigmoid else 0,
        bytes_accessed=(M * K + M * N) * itm + (K * N + N) * itw)

    kernel = functools.partial(_linear_tiled_kernel, k_total=K, tk=tk,
                               relu=relu, sigmoid=sigmoid)
    return pl.pallas_call(
        kernel,
        out_shape=jax.ShapeDtypeStruct((M, N), x.dtype),
        grid_spec=pltpu.PrefetchScalarGridSpec(
            num_scalar_prefetch=0,
            grid=(pl.cdiv(M, tm), pl.cdiv(N, tn), pl.cdiv(K, tk)),
            in_specs=[pl.BlockSpec((tm, tk), lambda i, j, k: (i, k)),
                      pl.BlockSpec((tk, tn), lambda i, j, k: (k, j)),
                      pl.BlockSpec((1, tn), lambda i, j, k: (0, j))],
            out_specs=pl.BlockSpec((tm, tn), lambda i, j, k: (i, j)),
            scratch_shapes=[pltpu.VMEM((tm, tn), jnp.float32)],
        ),
        compiler_params=pltpu.CompilerParams(
            dimension_semantics=("parallel", "parallel", "arbitrary"),
            vmem_limit_bytes=vmem_limit,
        ),
        cost_estimate=cost,
    )(x, w, b)


# ----------------------------------------------------------------------------
# Module wrapper (mirrors pointllm seg_xcoder.MLP).
# ----------------------------------------------------------------------------
class MLPPallas:
    """JAX/Pallas port of seg_xcoder.MLP.

    Parameters are created in the PyTorch nn.Linear convention
    (W: (out, in), b: (out,)) in f32 and stored for the kernels pre-transposed
    and pre-cast to `compute_dtype` (bf16 by default: MXU-native on
    v5e/v6e/v7x; accumulation stays f32).  Forward: ReLU after every layer
    except the last, optional final sigmoid.
    """

    _single_buffer_ok = True   # flipped off if Buffered(1) is rejected

    def __init__(self, input_dim, hidden_dim, output_dim, num_layers,
                 sigmoid_output=False, key=None, dtype=jnp.float32,
                 compute_dtype=jnp.bfloat16, feature_align=128,
                 force_tiled=False, tiled_tm=256, tiled_tn=256, tiled_tk=512):
        # feature_align: use 256 for production hidden widths on v6e/v7x
        # (2x256x256 MXU); 128 is optimal on v5e and fine for small dims.
        self.num_layers = num_layers
        self.sigmoid_output = sigmoid_output
        self.input_dim = input_dim
        self.output_dim = output_dim
        self.dtype = dtype
        self.compute_dtype = compute_dtype
        self.force_tiled = force_tiled
        self.tiled_tm, self.tiled_tn, self.tiled_tk = tiled_tm, tiled_tn, tiled_tk

        h = [hidden_dim] * (num_layers - 1)
        dims = list(zip([input_dim] + h, h + [output_dim]))
        if key is None:
            key = jax.random.PRNGKey(0)

        self.weights = []   # f32 PyTorch-convention params, for the reference
        self.biases = []
        fused, tiled = [], []
        for l, (n_in, n_out) in enumerate(dims):
            key, kw, kb = jax.random.split(key, 3)
            bound = 1.0 / float(n_in) ** 0.5
            w = jax.random.uniform(kw, (n_out, n_in), dtype=jnp.float32,
                                   minval=-bound, maxval=bound)
            b = jax.random.uniform(kb, (n_out,), dtype=jnp.float32,
                                   minval=-bound, maxval=bound)
            self.weights.append(w)
            self.biases.append(b)

            wt = w.T.astype(compute_dtype)                 # (in, out)
            bt = b.reshape(1, n_out).astype(compute_dtype)
            tiled.append((wt, bt))

            # Fused path: only hidden dims are zero-padded to the lane
            # alignment (padded lanes stay exactly 0 through matmul+bias+ReLU).
            k_pad = n_in if l == 0 else _round_up(n_in, feature_align)
            n_pad = n_out if l == num_layers - 1 else _round_up(n_out, feature_align)
            fused.append((_pad_to(wt, (k_pad, n_pad)), _pad_to(bt, (1, n_pad))))

        self._params_fused = tuple(fused)
        self._params_tiled = tuple(tiled)

    @staticmethod
    def _pick_row_tile(m, k0, n_out, max_width, weight_bytes, budget):
        # Bytes that scale with tm: double-buffered in/out tiles + generous
        # headroom for f32 intermediates.
        per_row = 2 * k0 * 4 + 2 * n_out * 4 + 4 * max_width * 4
        avail = max(budget - 2 * weight_bytes - (2 << 20), 1 << 20)
        cap = max(8, min(1024, (int(avail // per_row) // 8) * 8))
        tm = min(cap, max(8, (m // 8) * 8))
        # Keep at least 2 row tiles so both TensorCores get work on v7x.
        if m > 8 and pl.cdiv(m, tm) < 2:
            tm = max(8, _round_up(pl.cdiv(m, 2), 8))
        return tm

    def _tiled_forward(self, x2d):
        h = x2d
        for l, (w, b) in enumerate(self._params_tiled):
            last = (l == self.num_layers - 1)
            M, K = h.shape
            N = w.shape[1]
            tm = min(self.tiled_tm, max(8, (M // 8) * 8))
            tn = N if N <= self.tiled_tn else self.tiled_tn
            tk = K if K <= self.tiled_tk else self.tiled_tk
            h = _linear_tiled(h, w, b,
                              relu=(not last),
                              sigmoid=(last and self.sigmoid_output),
                              tm=tm, tn=tn, tk=tk)
        return h

    def __call__(self, x):
        lead = x.shape[:-1]
        x2d = x.reshape(-1, x.shape[-1]).astype(self.dtype)
        m = x2d.shape[0]

        budget = _vmem_budget_bytes()
        weight_bytes = sum(int(w.size) * w.dtype.itemsize +
                           int(b.size) * b.dtype.itemsize
                           for w, b in self._params_fused)
        use_fused = (not self.force_tiled) and \
            (2 * weight_bytes + (8 << 20) <= budget)

        if use_fused:
            max_width = max(max(w.shape[1] for w, _ in self._params_fused),
                            x2d.shape[1])
            tm = self._pick_row_tile(m, x2d.shape[1], self.output_dim,
                                     max_width, weight_bytes, budget)
            kwargs = dict(num_layers=self.num_layers,
                          sigmoid_output=self.sigmoid_output, tm=tm)
            try:
                out = _mlp_fused_forward(
                    x2d, self._params_fused,
                    single_buffer=MLPPallas._single_buffer_ok, **kwargs)
            except Exception:
                if not MLPPallas._single_buffer_ok:
                    raise
                # This jax build rejected single-buffered resident blocks;
                # retry with the default double buffering.
                MLPPallas._single_buffer_ok = False
                out = _mlp_fused_forward(x2d, self._params_fused,
                                         single_buffer=False, **kwargs)
        else:
            out = self._tiled_forward(x2d)

        return out.reshape(*lead, self.output_dim)


def _reference_forward(mlp, x):
    """Pure-JAX f32 reference with PyTorch-module semantics."""
    lead = x.shape[:-1]
    y = x.reshape(-1, x.shape[-1]).astype(jnp.float32)
    for i, (w, b) in enumerate(zip(mlp.weights, mlp.biases)):
        y = y @ w.T + b
        if i < mlp.num_layers - 1:
            y = jnp.maximum(y, 0.0)
    if mlp.sigmoid_output:
        y = jax.nn.sigmoid(y)
    return y.reshape(*lead, y.shape[-1])


if __name__ == "__main__":
    key = jax.random.PRNGKey(0)
    k1, k2, k3, kx1, kx2, kx3 = jax.random.split(key, 6)

    # 1) Main config (bf16 compute on the MXU, f32 accumulation).
    batch, seq = 2, 8
    input_dim, hidden_dim, output_dim, num_layers = 32, 32, 16, 3
    mlp = MLPPallas(input_dim, hidden_dim, output_dim, num_layers,
                    sigmoid_output=False, key=k1)
    x = jax.random.normal(kx1, (batch, seq, input_dim), dtype=jnp.float32)
    out = jax.block_until_ready(mlp(x))
    ref = _reference_forward(mlp, x)
    assert out.shape == (batch, seq, output_dim), out.shape
    assert jnp.allclose(out, ref, atol=1e-1, rtol=5e-2), "fused bf16 mismatch"

    # 1b) Strict f32-compute check of the fused kernel math.
    mlp_f32 = MLPPallas(input_dim, hidden_dim, output_dim, num_layers,
                        sigmoid_output=False, key=k1,
                        compute_dtype=jnp.float32)
    out_f32 = jax.block_until_ready(mlp_f32(x))
    ref_f32 = _reference_forward(mlp_f32, x)
    assert jnp.allclose(out_f32, ref_f32, atol=1e-4, rtol=1e-4), "fused f32 mismatch"

    # 2) Sigmoid output, ragged dims, partial last row tile (M = 15).
    mlp2 = MLPPallas(24, 40, 10, 2, sigmoid_output=True, key=k2)
    x2 = jax.random.normal(kx2, (3, 5, 24), dtype=jnp.float32)
    out2 = jax.block_until_ready(mlp2(x2))
    ref2 = _reference_forward(mlp2, x2)
    assert out2.shape == (3, 5, 10), out2.shape
    assert jnp.allclose(out2, ref2, atol=5e-2, rtol=5e-2), "sigmoid mismatch"

    # 3) Tiled per-layer fallback (auto-selected for large hidden dims);
    #    forced here, in f32, with a small K tile so the multi-step
    #    accumulation + masked partial M/N/K tiles are all exercised.
    mlp3 = MLPPallas(200, 300, 10, 3, sigmoid_output=False, key=k3,
                     compute_dtype=jnp.float32, force_tiled=True,
                     tiled_tk=128)
    x3 = jax.random.normal(kx3, (4, 7, 200), dtype=jnp.float32)
    out3 = jax.block_until_ready(mlp3(x3))
    ref3 = _reference_forward(mlp3, x3)
    assert out3.shape == (4, 7, 10), out3.shape
    assert jnp.allclose(out3, ref3, atol=1e-4, rtol=1e-4), "tiled fallback mismatch"

    print("KERNEL_OK")
</pallas_src>

<mosaic_0001>
module attributes {stable_mosaic.version = 11 : i64} {
  func.func @_mlp_fused_kernel(%arg0: i32, %arg1: memref<8x32xf32, #tpu.memory_space<vmem>>, %arg2: memref<32x128xbf16, #tpu.memory_space<vmem>>, %arg3: memref<1x128xbf16, #tpu.memory_space<vmem>>, %arg4: memref<128x128xbf16, #tpu.memory_space<vmem>>, %arg5: memref<1x128xbf16, #tpu.memory_space<vmem>>, %arg6: memref<128x16xbf16, #tpu.memory_space<vmem>>, %arg7: memref<1x16xbf16, #tpu.memory_space<vmem>>, %arg8: memref<8x16xf32, #tpu.memory_space<vmem>>) attributes {dimension_semantics = [#tpu.dimension_semantics<parallel>], iteration_bounds = array<i64: 2>, scalar_prefetch = 0 : i64, scratch_operands = 0 : i64, tpu.core_type = #tpu.core_type<tc>, window_params = [{transform_indices = @transform_0, window_bounds = array<i64: 8, 32>}, {pipeline_mode = #tpu.pipeline_mode<synchronous>, transform_indices = @transform_1, window_bounds = array<i64: 32, 128>}, {pipeline_mode = #tpu.pipeline_mode<synchronous>, transform_indices = @transform_2, window_bounds = array<i64: 1, 128>}, {pipeline_mode = #tpu.pipeline_mode<synchronous>, transform_indices = @transform_3, window_bounds = array<i64: 128, 128>}, {pipeline_mode = #tpu.pipeline_mode<synchronous>, transform_indices = @transform_4, window_bounds = array<i64: 1, 128>}, {pipeline_mode = #tpu.pipeline_mode<synchronous>, transform_indices = @transform_5, window_bounds = array<i64: 128, 16>}, {pipeline_mode = #tpu.pipeline_mode<synchronous>, transform_indices = @transform_6, window_bounds = array<i64: 1, 16>}, {transform_indices = @transform_7, window_bounds = array<i64: 8, 16>}]} {
    %c0 = arith.constant 0 : index
    %c0_0 = arith.constant 0 : index
    %0 = vector.load %arg1[%c0, %c0_0] : memref<8x32xf32, #tpu.memory_space<vmem>>, vector<8x32xf32>
    %1 = arith.truncf %0 : vector<8x32xf32> to vector<8x32xbf16>
    %c0_1 = arith.constant 0 : index
    %c0_2 = arith.constant 0 : index
    %2 = vector.load %arg2[%c0_1, %c0_2] : memref<32x128xbf16, #tpu.memory_space<vmem>>, vector<32x128xbf16>
    %cst = arith.constant dense<0.000000e+00> : vector<8x128xf32>
    %3 = tpu.matmul %1, %2, %cst {dimension_numbers = #tpu.dot_dimension_numbers<[1], [0], [0], [1], [0, 0, 1, 1], [], []>} : vector<8x32xbf16>, vector<32x128xbf16>, vector<8x128xf32> -> vector<8x128xf32>
    %c0_3 = arith.constant 0 : index
    %c0_4 = arith.constant 0 : index
    %4 = vector.load %arg3[%c0_3, %c0_4] : memref<1x128xbf16, #tpu.memory_space<vmem>>, vector<1x128xbf16>
    %5 = arith.extf %4 : vector<1x128xbf16> to vector<1x128xf32>
    %6 = vector.broadcast %5 : vector<1x128xf32> to vector<8x128xf32>
    %7 = arith.addf %3, %6 : vector<8x128xf32>
    %cst_5 = arith.constant 0.000000e+00 : f32
    %8 = vector.broadcast %cst_5 : f32 to vector<8x128xf32>
    %9 = arith.maximumf %7, %8 : vector<8x128xf32>
    %10 = arith.truncf %9 : vector<8x128xf32> to vector<8x128xbf16>
    %c0_6 = arith.constant 0 : index
    %c0_7 = arith.constant 0 : index
    %11 = vector.load %arg4[%c0_6, %c0_7] : memref<128x128xbf16, #tpu.memory_space<vmem>>, vector<128x128xbf16>
    %cst_8 = arith.constant dense<0.000000e+00> : vector<8x128xf32>
    %12 = tpu.matmul %10, %11, %cst_8 {dimension_numbers = #tpu.dot_dimension_numbers<[1], [0], [0], [1], [0, 0, 1, 1], [], []>} : vector<8x128xbf16>, vector<128x128xbf16>, vector<8x128xf32> -> vector<8x128xf32>
    %c0_9 = arith.constant 0 : index
    %c0_10 = arith.constant 0 : index
    %13 = vector.load %arg5[%c0_9, %c0_10] : memref<1x128xbf16, #tpu.memory_space<vmem>>, vector<1x128xbf16>
    %14 = arith.extf %13 : vector<1x128xbf16> to vector<1x128xf32>
    %15 = vector.broadcast %14 : vector<1x128xf32> to vector<8x128xf32>
    %16 = arith.addf %12, %15 : vector<8x128xf32>
    %cst_11 = arith.constant 0.000000e+00 : f32
    %17 = vector.broadcast %cst_11 : f32 to vector<8x128xf32>
    %18 = arith.maximumf %16, %17 : vector<8x128xf32>
    %19 = arith.truncf %18 : vector<8x128xf32> to vector<8x128xbf16>
    %c0_12 = arith.constant 0 : index
    %c0_13 = arith.constant 0 : index
    %20 = vector.load %arg6[%c0_12, %c0_13] : memref<128x16xbf16, #tpu.memory_space<vmem>>, vector<128x16xbf16>
    %cst_14 = arith.constant dense<0.000000e+00> : vector<8x16xf32>
    %21 = tpu.matmul %19, %20, %cst_14 {dimension_numbers = #tpu.dot_dimension_numbers<[1], [0], [0], [1], [0, 0, 1, 1], [], []>} : vector<8x128xbf16>, vector<128x16xbf16>, vector<8x16xf32> -> vector<8x16xf32>
    %c0_15 = arith.constant 0 : index
    %c0_16 = arith.constant 0 : index
    %22 = vector.load %arg7[%c0_15, %c0_16] : memref<1x16xbf16, #tpu.memory_space<vmem>>, vector<1x16xbf16>
    %23 = arith.extf %22 : vector<1x16xbf16> to vector<1x16xf32>
    %24 = vector.broadcast %23 : vector<1x16xf32> to vector<8x16xf32>
    %25 = arith.addf %21, %24 : vector<8x16xf32>
    %c0_17 = arith.constant 0 : index
    %c0_18 = arith.constant 0 : index
    %26 = vector.load %arg8[%c0_17, %c0_18] : memref<8x16xf32, #tpu.memory_space<vmem>>, vector<8x16xf32>
    tpu.vector_store %arg8[%c0_17, %c0_18], %25 {strides = array<i32>} : memref<8x16xf32, #tpu.memory_space<vmem>>, vector<8x16xf32>,
    return
  }
  func.func @transform_0(%arg0: i32) -> (i32, i32) {
    %c0_i32 = arith.constant 0 : i32
    %c0_i32_0 = arith.constant 0 : i32
    return %arg0, %c0_i32 : i32, i32
  }
  func.func @transform_1(%arg0: i32) -> (i32, i32) {
    %c0_i32 = arith.constant 0 : i32
    %c0_i32_0 = arith.constant 0 : i32
    %c0_i32_1 = arith.constant 0 : i32
    return %c0_i32, %c0_i32_0 : i32, i32
  }
  func.func @transform_2(%arg0: i32) -> (i32, i32) {
    %c0_i32 = arith.constant 0 : i32
    %c0_i32_0 = arith.constant 0 : i32
    %c0_i32_1 = arith.constant 0 : i32
    return %c0_i32, %c0_i32_0 : i32, i32
  }
  func.func @transform_3(%arg0: i32) -> (i32, i32) {
    %c0_i32 = arith.constant 0 : i32
    %c0_i32_0 = arith.constant 0 : i32
    %c0_i32_1 = arith.constant 0 : i32
    return %c0_i32, %c0_i32_0 : i32, i32
  }
  func.func @transform_4(%arg0: i32) -> (i32, i32) {
    %c0_i32 = arith.constant 0 : i32
    %c0_i32_0 = arith.constant 0 : i32
    %c0_i32_1 = arith.constant 0 : i32
    return %c0_i32, %c0_i32_0 : i32, i32
  }
  func.func @transform_5(%arg0: i32) -> (i32, i32) {
    %c0_i32 = arith.constant 0 : i32
    %c0_i32_0 = arith.constant 0 : i32
    %c0_i32_1 = arith.constant 0 : i32
    return %c0_i32, %c0_i32_0 : i32, i32
  }
  func.func @transform_6(%arg0: i32) -> (i32, i32) {
    %c0_i32 = arith.constant 0 : i32
    %c0_i32_0 = arith.constant 0 : i32
    %c0_i32_1 = arith.constant 0 : i32
    return %c0_i32, %c0_i32_0 : i32, i32
  }
  func.func @transform_7(%arg0: i32) -> (i32, i32) {
    %c0_i32 = arith.constant 0 : i32
    %c0_i32_0 = arith.constant 0 : i32
    return %arg0, %c0_i32 : i32, i32
  }
}

module attributes {stable_mosaic.version = 11 : i64} {
  func.func @_mlp_fused_kernel(%arg0: i32, %arg1: memref<8x32xf32, #tpu.memory_space<vmem>>, %arg2: memref<32x128xbf16, #tpu.memory_space<vmem>>, %arg3: memref<1x128xbf16, #tpu.memory_space<vmem>>, %arg4: memref<128x128xbf16, #tpu.memory_space<vmem>>, %arg5: memref<1x128xbf16, #tpu.memory_space<vmem>>, %arg6: memref<128x16xbf16, #tpu.memory_space<vmem>>, %arg7: memref<1x16xbf16, #tpu.memory_space<vmem>>, %arg8: memref<8x16xf32, #tpu.memory_space<vmem>>) attributes {dimension_semantics = [#tpu.dimension_semantics<parallel>], iteration_bounds = array<i64: 2>, scalar_prefetch = 0 : i64, scratch_operands = 0 : i64, tpu.core_type = #tpu.core_type<tc>, window_params = [{transform_indices = @transform_0, window_bounds = array<i64: 8, 32>}, {pipeline_mode = #tpu.pipeline_mode<synchronous>, transform_indices = @transform_1, window_bounds = array<i64: 32, 128>}, {pipeline_mode = #tpu.pipeline_mode<synchronous>, transform_indices = @transform_2, window_bounds = array<i64: 1, 128>}, {pipeline_mode = #tpu.pipeline_mode<synchronous>, transform_indices = @transform_3, window_bounds = array<i64: 128, 128>}, {pipeline_mode = #tpu.pipeline_mode<synchronous>, transform_indices = @transform_4, window_bounds = array<i64: 1, 128>}, {pipeline_mode = #tpu.pipeline_mode<synchronous>, transform_indices = @transform_5, window_bounds = array<i64: 128, 16>}, {pipeline_mode = #tpu.pipeline_mode<synchronous>, transform_indices = @transform_6, window_bounds = array<i64: 1, 16>}, {transform_indices = @transform_7, window_bounds = array<i64: 8, 16>}]} {
    %c0 = arith.constant 0 : index
    %c0_0 = arith.constant 0 : index
    %0 = vector.load %arg1[%c0, %c0_0] : memref<8x32xf32, #tpu.memory_space<vmem>>, vector<8x32xf32>
    %1 = arith.truncf %0 : vector<8x32xf32> to vector<8x32xbf16>
    %c0_1 = arith.constant 0 : index
    %c0_2 = arith.constant 0 : index
    %2 = vector.load %arg2[%c0_1, %c0_2] : memref<32x128xbf16, #tpu.memory_space<vmem>>, vector<32x128xbf16>
    %cst = arith.constant dense<0.000000e+00> : vector<8x128xf32>
    %3 = tpu.matmul %1, %2, %cst {dimension_numbers = #tpu.dot_dimension_numbers<[1], [0], [0], [1], [0, 0, 1, 1], [], []>} : vector<8x32xbf16>, vector<32x128xbf16>, vector<8x128xf32> -> vector<8x128xf32>
    %c0_3 = arith.constant 0 : index
    %c0_4 = arith.constant 0 : index
    %4 = vector.load %arg3[%c0_3, %c0_4] : memref<1x128xbf16, #tpu.memory_space<vmem>>, vector<1x128xbf16>
    %5 = arith.extf %4 : vector<1x128xbf16> to vector<1x128xf32>
    %6 = vector.broadcast %5 : vector<1x128xf32> to vector<8x128xf32>
    %7 = arith.addf %3, %6 : vector<8x128xf32>
    %cst_5 = arith.constant 0.000000e+00 : f32
    %8 = vector.broadcast %cst_5 : f32 to vector<8x128xf32>
    %9 = arith.maximumf %7, %8 : vector<8x128xf32>
    %10 = arith.truncf %9 : vector<8x128xf32> to vector<8x128xbf16>
    %c0_6 = arith.constant 0 : index
    %c0_7 = arith.constant 0 : index
    %11 = vector.load %arg4[%c0_6, %c0_7] : memref<128x128xbf16, #tpu.memory_space<vmem>>, vector<128x128xbf16>
    %cst_8 = arith.constant dense<0.000000e+00> : vector<8x128xf32>
    %12 = tpu.matmul %10, %11, %cst_8 {dimension_numbers = #tpu.dot_dimension_numbers<[1], [0], [0], [1], [0, 0, 1, 1], [], []>} : vector<8x128xbf16>, vector<128x128xbf16>, vector<8x128xf32> -> vector<8x128xf32>
    %c0_9 = arith.constant 0 : index
    %c0_10 = arith.constant 0 : index
    %13 = vector.load %arg5[%c0_9, %c0_10] : memref<1x128xbf16, #tpu.memory_space<vmem>>, vector<1x128xbf16>
    %14 = arith.extf %13 : vector<1x128xbf16> to vector<1x128xf32>
    %15 = vector.broadcast %14 : vector<1x128xf32> to vector<8x128xf32>
    %16 = arith.addf %12, %15 : vector<8x128xf32>
    %cst_11 = arith.constant 0.000000e+00 : f32
    %17 = vector.broadcast %cst_11 : f32 to vector<8x128xf32>
    %18 = arith.maximumf %16, %17 : vector<8x128xf32>
    %19 = arith.truncf %18 : vector<8x128xf32> to vector<8x128xbf16>
    %c0_12 = arith.constant 0 : index
    %c0_13 = arith.constant 0 : index
    %20 = vector.load %arg6[%c0_12, %c0_13] : memref<128x16xbf16, #tpu.memory_space<vmem>>, vector<128x16xbf16>
    %cst_14 = arith.constant dense<0.000000e+00> : vector<8x16xf32>
    %21 = tpu.matmul %19, %20, %cst_14 {dimension_numbers = #tpu.dot_dimension_numbers<[1], [0], [0], [1], [0, 0, 1, 1], [], []>} : vector<8x128xbf16>, vector<128x16xbf16>, vector<8x16xf32> -> vector<8x16xf32>
    %c0_15 = arith.constant 0 : index
    %c0_16 = arith.constant 0 : index
    %22 = vector.load %arg7[%c0_15, %c0_16] : memref<1x16xbf16, #tpu.memory_space<vmem>>, vector<1x16xbf16>
    %23 = arith.extf %22 : vector<1x16xbf16> to vector<1x16xf32>
    %24 = vector.broadcast %23 : vector<1x16xf32> to vector<8x16xf32>
    %25 = arith.addf %21, %24 : vector<8x16xf32>
    %c0_17 = arith.constant 0 : index
    %c0_18 = arith.constant 0 : index
    %26 = vector.load %arg8[%c0_17, %c0_18] : memref<8x16xf32, #tpu.memory_space<vmem>>, vector<8x16xf32>
    tpu.vector_store %arg8[%c0_17, %c0_18], %25 {strides = array<i32>} : memref<8x16xf32, #tpu.memory_space<vmem>>, vector<8x16xf32>,
    return
  }
  func.func @transform_0(%arg0: i32) -> (i32, i32) {
    %c0_i32 = arith.constant 0 : i32
    %c0_i32_0 = arith.constant 0 : i32
    return %arg0, %c0_i32 : i32, i32
  }
  func.func @transform_1(%arg0: i32) -> (i32, i32) {
    %c0_i32 = arith.constant 0 : i32
    %c0_i32_0 = arith.constant 0 : i32
    %c0_i32_1 = arith.constant 0 : i32
    return %c0_i32, %c0_i32_0 : i32, i32
  }
  func.func @transform_2(%arg0: i32) -> (i32, i32) {
    %c0_i32 = arith.constant 0 : i32
    %c0_i32_0 = arith.constant 0 : i32
    %c0_i32_1 = arith.constant 0 : i32
    return %c0_i32, %c0_i32_0 : i32, i32
  }
  func.func @transform_3(%arg0: i32) -> (i32, i32) {
    %c0_i32 = arith.constant 0 : i32
    %c0_i32_0 = arith.constant 0 : i32
    %c0_i32_1 = arith.constant 0 : i32
    return %c0_i32, %c0_i32_0 : i32, i32
  }
  func.func @transform_4(%arg0: i32) -> (i32, i32) {
    %c0_i32 = arith.constant 0 : i32
    %c0_i32_0 = arith.constant 0 : i32
    %c0_i32_1 = arith.constant 0 : i32
    return %c0_i32, %c0_i32_0 : i32, i32
  }
  func.func @transform_5(%arg0: i32) -> (i32, i32) {
    %c0_i32 = arith.constant 0 : i32
    %c0_i32_0 = arith.constant 0 : i32
    %c0_i32_1 = arith.constant 0 : i32
    return %c0_i32, %c0_i32_0 : i32, i32
  }
  func.func @transform_6(%arg0: i32) -> (i32, i32) {
    %c0_i32 = arith.constant 0 : i32
    %c0_i32_0 = arith.constant 0 : i32
    %c0_i32_1 = arith.constant 0 : i32
    return %c0_i32, %c0_i32_0 : i32, i32
  }
  func.func @transform_7(%arg0: i32) -> (i32, i32) {
    %c0_i32 = arith.constant 0 : i32
    %c0_i32_0 = arith.constant 0 : i32
    return %arg0, %c0_i32 : i32, i32
  }
}

</mosaic_0001>

<bundles_post_ra>
// kernel: _mlp_fused_forward.1
= control target key start
LH: loop header
LB: loop body
LE: loop exit
PB: predicated region body
PF: predicated region fallthrough
CT: control target
= control target key end

     0   :  { %s1150_s0 = inlined_call_operand.hbm [shape: f32[16,32], index: 0, kind: input, shape index: {}]   ;;  %s1151_s1 = inlined_call_operand.hbm [shape: bf16[32,128], index: 1, kind: input, shape index: {}]   ;;  %s1152_s2 = inlined_call_operand.vmem [shape: bf16[1,128], index: 2, kind: input, shape index: {}]   ;;  %s1153_s3 = inlined_call_operand.vmem [shape: bf16[128,128], index: 3, kind: input, shape index: {}]   ;;  %s1154_s4 = inlined_call_operand.vmem [shape: bf16[1,128], index: 4, kind: input, shape index: {}]   ;;  %s1155_s5 = inlined_call_operand.vmem [shape: bf16[128,16], index: 5, kind: input, shape index: {}]   ;;  %s1156_s6 = inlined_call_operand.vmem [shape: bf16[1,16], index: 6, kind: input, shape index: {}]   ;;  %s1157_s7 = inlined_call_operand.hbm [shape: f32[16,16], index: 7, kind: output, shape index: {}]  }
   0x1   :  { %1158 = sst [smem:[#allocation11_spill]] %s1151_s1 }
   0x2   :  { %12 = vsyncpa [#allocation3], 0 }
   0x3   :  { %14 = vsyncpa [#allocation3 + $0x1], 0 }
   0x4   :  { %15 = vsyncpa [#allocation6], 0 }
   0x5   :  { %16 = vsyncpa [#allocation4], 0 }
   0x6   :  { %18 = vsyncpa [#allocation4 + $0x1], 0  ;;  %s953_s24 = smov 0   ;;  %s955_s25 = smov 0  }
   0x7   :  { %s957_s26 = smov 0   ;;  %s959_s27 = smov 0  }
   0x8 LB: > { %s1159_s1 = sld [smem:[#allocation11_spill]]  ;;  %s977_s8 = sadd.s32 4294967295, %s908_s27   ;;  %s908_s27 = sphi %s959_s27, %s1169_s27   ;;  %s904_s26 = sphi %s957_s26, %s1168_s26   ;;  %s900_s25 = sphi %s955_s25, %s1167_s25   ;;  %s896_s24 = sphi %s953_s24, %s1166_s24  }
   0x9   : > { %p615_p0 = scmp.ge.s32.totalorder %s908_s27, 1  ;;  %p45_p1 = scmp.eq.s32.totalorder %s977_s8, 0 }
   0xa   : > { %p207_p2 = scmp.lt.s32.totalorder %s908_s27, 3  ;;  %s910_s10 = smov [#allocation5]  }
   0xb   : > { %s220_s11 = sshll.u32 %s910_s10, 4  ;;  %s911_s12 = smov 64   ;;  %s221_s11 = int_to_ptr.vmem [resolvable:$true] %s220_s11 }
   0xc   : > { %p982_p3 = pnand %p615_p0, %p207_p2  ;;  %s912_s13 = smov 4  }
   0xd   : > { %s614_s14 = sadd.s32 4294967294, %s908_s27   ;;  %s993_s15 = sadd.s32 1, %s908_s27  }
   0xe   : > { %s218_s30 = sshll.u32 %s1159_s1, 4  ;;  %p727_p4 = pneg %p982_p3  ;;  %s219_s30 = int_to_ptr.hbm [resolvable:$true] %s218_s30 }
   0xf   : > { %s31_s16 = sadd.s32 1, %s904_s26  ;;  %s28_s17 = ssub.s32 %s908_s27, %s993_s15 }
  0x10   : > { %p728_p6 = pnand %p727_p4, %p45_p1  ;;  %p38_p7 = scmp.ne.s32.totalorder %s904_s26, %s900_s25 }
  0x11   : > { %p29_p8 = scmp.eq.s32.totalorder %s28_s17, 0  ;;  %p39_p9 = scmp.eq.s32.totalorder %s908_s27, 0 }
  0x12   : > { %730 = dma.hbm_to_vmem [thread:$0]  (!%p728_p6), %s219_s30, 256, %s221_s11, [#allocation6], %s911_s12, %s911_s12, %s912_s13  }
  0x13   : > { %p44_p10 = scmp.ne.s32.totalorder %s900_s25, %s896_s24  ;;  %p194_p11 = scmp.eq.s32.totalorder %s977_s8, 1 }
  0x14   : > { %s1005_s18 = scalar_select %p29_p8, %s904_s26, %s31_s16  }
  0x15   : > { %p1009_p12 = por %p45_p1, %p44_p10  ;;  %p1013_p13 = por %p194_p11, %p38_p7 }
  0x16   : > { %p200_p0 = scmp.eq.s32.totalorder %s614_s14, 1  ;;  %p40_p2 = por %p39_p9, %p38_p7 }
  0x17   : > { %s249_s21 = sand.u32 1, %s904_s26   ;;  %p740_p6 = scmp.lt.s32.totalorder %s908_s27, 2 }
  0x18   : > { %p1018_p4 = por %p200_p0, %p44_p10  ;;  %s618_s23 = sshll.u32 %s249_s21, 3 }
  0x19   : > { %s619_s28 = sshll.u32 %s908_s27, 3  ;;  %s253_s12 = scalar_lea.vmem [#allocation2], %s618_s23 }
  0x1a   : > { %s257_s10 = scalar_lea.hbm %s1150_s0, %s619_s28  ;;  %s261_s13 = sshll.u32 %s253_s12, 4  ;;  %s262_s13 = int_to_ptr.vmem [resolvable:$true] %s261_s13 }
  0x1b   : > { %s259_s11 = sshll.u32 %s257_s10, 4  ;;  %p1027_p8 = pnand %p740_p6, %p40_p2  ;;  %s260_s11 = int_to_ptr.hbm [resolvable:$true] %s259_s11 }
  0x1c   : > { %s250_s16 = scalar_lea.sflag [#allocation3], %s249_s21  ;;  %s808_s17 = sshra.s32 %s260_s11, 4  ;;  %s809_s17 = int_to_ptr.hbm [resolvable:$true] %s808_s17 }
  0x1d   : > { %s810_s1 = scalar_lea.hbm %s809_s17, 8  ;;  %p812_p9 = pneg %p1027_p8 }
  0x1e   : > { %p811_p7 = scmp.ne.s32.totalorder %s809_s17, %s810_s1  ;;  %s815_s23 = scalar_lea.hbm %s1150_s0, 16 }
  0x1f   : > { %p816_p0 = scmp.lt.s32.totalorder %s809_s17, %s1150_s0  ;;  %p817_p2 = scmp.lt.s32.totalorder %s815_s23, %s810_s1 }
  0x20   : > { %p813_p10 = pnand %p812_p9, %p811_p7 }
  0x21   : > { %p818_p6 = por %p817_p2, %p816_p0 }
  0x22   : > { %p814_p11 = pneg %p813_p10 }
  0x24   : > { %p819_p5 = pnand %p818_p6, %p814_p11 }
  0x26   : > { %822 = shalt.err (!%p819_p5)
}
  0x27   : > { %734 = dma.hbm_to_vmem [thread:$0]  (!%p1027_p8), %s260_s11, 128, %s262_s13, %s250_s16  }
  0x28   : > { %270 = sbr.rel (%p982_p3) target bundleno = 460 (0x1cc), region = 48  ;;  %s1044_s21 = sand.u32 (!%p982_p3), 1, %s900_s25  }
  0x29   : > { %s621_s12 = sshll.u32 (!%p982_p3), %s1044_s21, 3  ;;  %s273_s28 = scalar_lea.sflag (!%p982_p3), [#allocation3], %s1044_s21 }
  0x2a   : > { %s276_s1 = scalar_lea.vmem (!%p982_p3), [#allocation2], %s621_s12 }
  0x2d   : > { %883 = dma.done.wait (%p1009_p12), %s273_s28, 128  }
  0x2e   : > { %885 = vsyncadd (%p1009_p12), %s273_s28, 4294967168 }
  0x2f   : > { %887 = dma.done.wait (%p45_p1), [#allocation6], 256  }
  0x30   : > { %889 = vsyncadd (%p45_p1), [#allocation6], 4294967040  ;;  %v702_v0 = vld [vmem:[#allocation5 + $0x8] sm:$0xff]  ;;  %v701_v2 = vld [vmem:[#allocation5] sm:$0xff]  ;;  %vm335_vm0 = vcmask 261120   ;;  %s312_s14 = scalar_lea.vmem [#allocation7], %s621_s12 }
  0x31   : > { %v710_v1 = vld [vmem:[%s1153_s3 + $0x38] sm:$0xff]  ;;  %345 = vmatpush.bf16.msra.mxu0 %v702_v0  ;;  %v314_v3 = vld [vmem:[%s276_s1] sm:$0xff]  ;;  %v709_v4 = vld [vmem:[%s1153_s3 + $0x30] sm:$0xff]  ;;  %s698_s1 = sshll.u32 %s977_s8, 3  ;;  %s531_s19 = sshll.u32 %s312_s14, 4  ;;  %vm516_vm1 = vcmask 130048   ;;  %s532_s19 = int_to_ptr.vmem [resolvable:$true] %s531_s19 }
  0x32   : > { %421 = vmatpush.bf16.msra.mxu1 %v710_v1  ;;  %v315_v5 = vpack.c.bf16 %v314_v3, %v314_v3  ;;  %v708_v6 = vld [vmem:[%s1153_s3 + $0x28] sm:$0xff]  ;;  %v707_v7 = vld [vmem:[%s1153_s3 + $0x20] sm:$0xff]  ;;  %v706_v8 = vld [vmem:[%s1153_s3 + $0x18] sm:$0xff]  ;;  %s529_s13 = scalar_lea.hbm %s1157_s7, %s698_s1  ;;  %s519_s17 = scalar_lea.sflag [#allocation4], %s1044_s21 }
  0x33   : > { %v705_v9 = vld [vmem:[%s1153_s3 + $0x10] sm:$0xff]  ;;  %v704_v10 = vld [vmem:[%s1153_s3 + $0x8] sm:$0xff]  ;;  %v703_v11 = vld [vmem:[%s1153_s3] sm:$0xff]  ;;  %s533_s16 = sshll.u32 %s529_s13, 4  ;;  %s858_s12 = scalar_lea.hbm %s1157_s7, 16  ;;  %s534_s16 = int_to_ptr.hbm [resolvable:$true] %s533_s16 }
  0x34   : > { %v718_v12 = vld [vmem:[%s1155_s5 + $0x38] sm:$0xff]  ;;  %v717_v13 = vld [vmem:[%s1155_s5 + $0x30] sm:$0xff]  ;;  %v716_v14 = vld [vmem:[%s1155_s5 + $0x28] sm:$0xff]  ;;  %s852_s29 = sshra.s32 %s534_s16, 4  ;;  %s853_s29 = int_to_ptr.hbm [resolvable:$true] %s852_s29 }
  0x35   : > { %346 = vmatpush.bf16.msra.mxu0 %v701_v2  ;;  %503 = vmatpush.bf16.msra.mxu2 %v718_v12  ;;  %v715_v15 = vld [vmem:[%s1155_s5 + $0x20] sm:$0xff]  ;;  %v714_v17 = vld [vmem:[%s1155_s5 + $0x18] sm:$0xff]  ;;  %v713_v19 = vld [vmem:[%s1155_s5 + $0x10] sm:$0xff]  ;;  %s854_s8 = scalar_lea.hbm %s853_s29, 8  ;;  %p859_p12 = scmp.lt.s32.totalorder %s853_s29, %s1157_s7 }
  0x36   : > { %422 = vmatpush.bf16.msra.mxu1 %v709_v4  ;;  %v320_v16 = vld [vmem:[%s1152_s2] sm:$0x1]  ;;  %v712_v26 = vld [vmem:[%s1155_s5 + $0x8] sm:$0xff]  ;;  %p855_p1 = scmp.ne.s32.totalorder %s853_s29, %s854_s8  ;;  %p860_p8 = scmp.lt.s32.totalorder %s858_s12, %s854_s8 }
  0x37   : > { %v321_v18 = vunpack.c.l.bf16 %v320_v16  ;;  %v711_v27 = vld [vmem:[%s1155_s5] sm:$0xff] }
  0x38   : > { %632 = vmatmul.msk.bf16.vlgmr.msra.gmra.mxu0 %vm335_vm0, %v315_v5  ;;  %v370_v28 = vld [vmem:[%s1154_s4] sm:$0x1]  ;;  %p856_p3 = pnand %p855_p1, %p1013_p13  ;;  %p861_p7 = por %p860_p8, %p859_p12 }
  0x39   : > { %504 = vmatpush.bf16.msra.mxu2 %v717_v13  ;;  %v322_v20 = vperm.slane %v321_v18, 0  ;;  %v371_v29 = vunpack.c.l.bf16 %v370_v28  ;;  %v452_v36 = vld [vmem:[%s1156_s6] sm:$0x1] }
  0x3a   : > { %423 = vmatpush.bf16.msra.mxu1 %v708_v6  ;;  %v453_v37 = vunpack.c.l.bf16 %v452_v36  ;;  %p857_p5 = pneg %p856_p3 }
  0x3b   : > { %v372_v30 = vperm.slane %v371_v29, 0 }
  0x3c   : > { %v454_v38 = vperm.slane %v453_v37, 0  ;;  %p862_p9 = pnand %p861_p7, %p857_p5 }
  0x3d   : > { %505 = vmatpush.bf16.msra.mxu2 %v716_v14 }
  0x3e   : > { %424 = vmatpush.bf16.msra.mxu1 %v707_v7 }
  0x41   : > { %506 = vmatpush.bf16.msra.mxu2 %v715_v15 }
  0x42   : > { %425 = vmatpush.bf16.msra.mxu1 %v706_v8 }
  0x45   : > { %507 = vmatpush.bf16.msra.mxu2 %v714_v17 }
  0x46   : > { %426 = vmatpush.bf16.msra.mxu1 %v705_v9 }
  0x49   : > { %508 = vmatpush.bf16.msra.mxu2 %v713_v19 }
  0x4a   : > { %427 = vmatpush.bf16.msra.mxu1 %v704_v10 }
  0x4d   : > { %509 = vmatpush.bf16.msra.mxu2 %v712_v26 }
  0x4e   : > { %428 = vmatpush.bf16.msra.mxu1 %v703_v11 }
  0x51   : > { %510 = vmatpush.bf16.msra.mxu2 %v711_v27 }
  0xb5   : > { %v348_v21 = vpop.f32.mrf.mxu0 }
  0xb6   : > { %v349_v22 = vadd.f32 %v348_v21, %v322_v20 }
  0xb8   : > { %v352_v23 = vmax.f32 %v349_v22, 0.0 }
  0xba   : > { %v353_v24 = vpack.c.bf16 %v352_v23, %v352_v23 }
  0xbc   : > { %429 = vmatmul.bf16.vlgmr.msra.gmra.mxu1 %v353_v24 }
  0xbd   : > { %v350_v25 = vpop.f32.mrf.mxu0 }
 0x139   : > { %v430_v31 = vpop.f32.mrf.mxu1 }
 0x13a   : > { %v431_v32 = vadd.f32 %v430_v31, %v372_v30 }
 0x13c   : > { %v434_v33 = vmax.f32 %v431_v32, 0.0 }
 0x13e   : > { %v435_v34 = vpack.c.bf16 %v434_v33, %v434_v33 }
 0x140   : > { %511 = vmatmul.bf16.vlgmr.msra.gmra.mxu2 %v435_v34 }
 0x141   : > { %v432_v35 = vpop.f32.mrf.mxu1 }
 0x1c3   : > { %v512_v39 = vpop.f32.mrf.mxu2 }
 0x1c4   : > { %v513_v40 = vadd.f32 %v512_v39, %v454_v38 }
 0x1c6   : > { %517 = vst.msk [vmem:[%s312_s14] sm:$0xff] %vm516_vm1, %v513_v40 }
 0x1c7   : > { %865 = shalt.err (!%p862_p9)
}
 0x1c8   : > { %725 = dma.vmem_to_hbm [thread:$0]  (%p1013_p13), %s532_s19, 128, %s534_s16, %s519_s17  }
 0x1cb   : > { %v514_v41 = vpop.f32.mrf.mxu2 }
 0x1cc PF: > { %s545_s21 = sand.u32 1, %s896_s24   ;;  %p1165_p10 = scmp.ge.s32.totalorder %s908_s27, 2 }
 0x1cd   : > { %s546_s1 = scalar_lea.sflag [#allocation4], %s545_s21 }
 0x1ce   : > { %p736_p11 = pnand %p1165_p10, %p1018_p4 }
 0x1d0   : > { %p737_p0 = pneg %p736_p11 }
 0x1d2   : > { %891 = dma.done.wait (%p737_p0), %s546_s1, 128  }
 0x1d3   : > { %893 = vsyncadd (%p737_p0), %s546_s1, 4294967168  ;;  %p21_p2 = scmp.ge.s32.totalorder %s993_s15, 4   ;;  %s1166_s24 = smov %s900_s25 }
 0x1d4   : > { %s1167_s25 = smov %s904_s26  ;;  %s1168_s26 = smov %s1005_s18 }
 0x1d5   : > { %s1169_s27 = smov %s993_s15  ;;  %23 = sbr.rel (!%p21_p2) target bundleno = 8 (0x8), region = 97 }
 0x1da   :  { %552 = vsyncpa [#allocation3], 1 }
 0x1db   :  { %554 = vsyncpa [#allocation3 + $0x1], 1 }
 0x1dc   :  { %555 = vsyncpa [#allocation6], 1 }
 0x1dd   :  { %556 = vsyncpa [#allocation4], 1 }
 0x1de   :  { %558 = vsyncpa [#allocation4 + $0x1], 1 }

// kernel: _mlp_fused_forward.1
= control target key start
LH: loop header
LB: loop body
LE: loop exit
PB: predicated region body
PF: predicated region fallthrough
CT: control target
= control target key end

     0   :  { %s1150_s0 = inlined_call_operand.hbm [shape: f32[16,32], index: 0, kind: input, shape index: {}]   ;;  %s1151_s1 = inlined_call_operand.hbm [shape: bf16[32,128], index: 1, kind: input, shape index: {}]   ;;  %s1152_s2 = inlined_call_operand.vmem [shape: bf16[1,128], index: 2, kind: input, shape index: {}]   ;;  %s1153_s3 = inlined_call_operand.vmem [shape: bf16[128,128], index: 3, kind: input, shape index: {}]   ;;  %s1154_s4 = inlined_call_operand.vmem [shape: bf16[1,128], index: 4, kind: input, shape index: {}]   ;;  %s1155_s5 = inlined_call_operand.vmem [shape: bf16[128,16], index: 5, kind: input, shape index: {}]   ;;  %s1156_s6 = inlined_call_operand.vmem [shape: bf16[1,16], index: 6, kind: input, shape index: {}]   ;;  %s1157_s7 = inlined_call_operand.hbm [shape: f32[16,16], index: 7, kind: output, shape index: {}]  }
   0x1   :  { %1158 = sst [smem:[#allocation11_spill]] %s1151_s1 }
   0x2   :  { %12 = vsyncpa [#allocation3], 0 }
   0x3   :  { %14 = vsyncpa [#allocation3 + $0x1], 0 }
   0x4   :  { %15 = vsyncpa [#allocation6], 0 }
   0x5   :  { %16 = vsyncpa [#allocation4], 0 }
   0x6   :  { %18 = vsyncpa [#allocation4 + $0x1], 0  ;;  %s953_s24 = smov 0   ;;  %s955_s25 = smov 0  }
   0x7   :  { %s957_s26 = smov 0   ;;  %s959_s27 = smov 0  }
   0x8 LB: > { %s1159_s1 = sld [smem:[#allocation11_spill]]  ;;  %s977_s8 = sadd.s32 4294967295, %s908_s27   ;;  %s908_s27 = sphi %s959_s27, %s1169_s27   ;;  %s904_s26 = sphi %s957_s26, %s1168_s26   ;;  %s900_s25 = sphi %s955_s25, %s1167_s25   ;;  %s896_s24 = sphi %s953_s24, %s1166_s24  }
   0x9   : > { %p615_p0 = scmp.ge.s32.totalorder %s908_s27, 1  ;;  %p45_p1 = scmp.eq.s32.totalorder %s977_s8, 0 }
   0xa   : > { %p207_p2 = scmp.lt.s32.totalorder %s908_s27, 3  ;;  %s910_s10 = smov [#allocation5]  }
   0xb   : > { %s220_s11 = sshll.u32 %s910_s10, 4  ;;  %s911_s12 = smov 64   ;;  %s221_s11 = int_to_ptr.vmem [resolvable:$true] %s220_s11 }
   0xc   : > { %p982_p3 = pnand %p615_p0, %p207_p2  ;;  %s912_s13 = smov 4  }
   0xd   : > { %s614_s14 = sadd.s32 4294967294, %s908_s27   ;;  %s993_s15 = sadd.s32 1, %s908_s27  }
   0xe   : > { %s218_s30 = sshll.u32 %s1159_s1, 4  ;;  %p727_p4 = pneg %p982_p3  ;;  %s219_s30 = int_to_ptr.hbm [resolvable:$true] %s218_s30 }
   0xf   : > { %s31_s16 = sadd.s32 1, %s904_s26  ;;  %s28_s17 = ssub.s32 %s908_s27, %s993_s15 }
  0x10   : > { %p728_p6 = pnand %p727_p4, %p45_p1  ;;  %p38_p7 = scmp.ne.s32.totalorder %s904_s26, %s900_s25 }
  0x11   : > { %p29_p8 = scmp.eq.s32.totalorder %s28_s17, 0  ;;  %p39_p9 = scmp.eq.s32.totalorder %s908_s27, 0 }
  0x12   : > { %730 = dma.hbm_to_vmem [thread:$0]  (!%p728_p6), %s219_s30, 256, %s221_s11, [#allocation6], %s911_s12, %s911_s12, %s912_s13  }
  0x13   : > { %p44_p10 = scmp.ne.s32.totalorder %s900_s25, %s896_s24  ;;  %p194_p11 = scmp.eq.s32.totalorder %s977_s8, 1 }
  0x14   : > { %s1005_s18 = scalar_select %p29_p8, %s904_s26, %s31_s16  }
  0x15   : > { %p1009_p12 = por %p45_p1, %p44_p10  ;;  %p1013_p13 = por %p194_p11, %p38_p7 }
  0x16   : > { %p200_p0 = scmp.eq.s32.totalorder %s614_s14, 1  ;;  %p40_p2 = por %p39_p9, %p38_p7 }
  0x17   : > { %s249_s21 = sand.u32 1, %s904_s26   ;;  %p740_p6 = scmp.lt.s32.totalorder %s908_s27, 2 }
  0x18   : > { %p1018_p4 = por %p200_p0, %p44_p10  ;;  %s618_s23 = sshll.u32 %s249_s21, 3 }
  0x19   : > { %s619_s28 = sshll.u32 %s908_s27, 3  ;;  %s253_s12 = scalar_lea.vmem [#allocation2], %s618_s23 }
  0x1a   : > { %s257_s10 = scalar_lea.hbm %s1150_s0, %s619_s28  ;;  %s261_s13 = sshll.u32 %s253_s12, 4  ;;  %s262_s13 = int_to_ptr.vmem [resolvable:$true] %s261_s13 }
  0x1b   : > { %s259_s11 = sshll.u32 %s257_s10, 4  ;;  %p1027_p8 = pnand %p740_p6, %p40_p2  ;;  %s260_s11 = int_to_ptr.hbm [resolvable:$true] %s259_s11 }
  0x1c   : > { %s250_s16 = scalar_lea.sflag [#allocation3], %s249_s21  ;;  %s808_s17 = sshra.s32 %s260_s11, 4  ;;  %s809_s17 = int_to_ptr.hbm [resolvable:$true] %s808_s17 }
  0x1d   : > { %s810_s1 = scalar_lea.hbm %s809_s17, 8  ;;  %p812_p9 = pneg %p1027_p8 }
  0x1e   : > { %p811_p7 = scmp.ne.s32.totalorder %s809_s17, %s810_s1  ;;  %s815_s23 = scalar_lea.hbm %s1150_s0, 16 }
  0x1f   : > { %p816_p0 = scmp.lt.s32.totalorder %s809_s17, %s1150_s0  ;;  %p817_p2 = scmp.lt.s32.totalorder %s815_s23, %s810_s1 }
  0x20   : > { %p813_p10 = pnand %p812_p9, %p811_p7 }
  0x21   : > { %p818_p6 = por %p817_p2, %p816_p0 }
  0x22   : > { %p814_p11 = pneg %p813_p10 }
  0x24   : > { %p819_p5 = pnand %p818_p6, %p814_p11 }
  0x26   : > { %822 = shalt.err (!%p819_p5)
}
  0x27   : > { %734 = dma.hbm_to_vmem [thread:$0]  (!%p1027_p8), %s260_s11, 128, %s262_s13, %s250_s16  }
  0x28   : > { %270 = sbr.rel (%p982_p3) target bundleno = 460 (0x1cc), region = 48  ;;  %s1044_s21 = sand.u32 (!%p982_p3), 1, %s900_s25  }
  0x29   : > { %s621_s12 = sshll.u32 (!%p982_p3), %s1044_s21, 3  ;;  %s273_s28 = scalar_lea.sflag (!%p982_p3), [#allocation3], %s1044_s21 }
  0x2a   : > { %s276_s1 = scalar_lea.vmem (!%p982_p3), [#allocation2], %s621_s12 }
  0x2d   : > { %883 = dma.done.wait (%p1009_p12), %s273_s28, 128  }
  0x2e   : > { %885 = vsyncadd (%p1009_p12), %s273_s28, 4294967168 }
  0x2f   : > { %887 = dma.done.wait (%p45_p1), [#allocation6], 256  }
  0x30   : > { %889 = vsyncadd (%p45_p1), [#allocation6], 4294967040  ;;  %v702_v0 = vld [vmem:[#allocation5 + $0x8] sm:$0xff]  ;;  %v701_v2 = vld [vmem:[#allocation5] sm:$0xff]  ;;  %vm335_vm0 = vcmask 261120   ;;  %s312_s14 = scalar_lea.vmem [#allocation7], %s621_s12 }
  0x31   : > { %v710_v1 = vld [vmem:[%s1153_s3 + $0x38] sm:$0xff]  ;;  %345 = vmatpush.bf16.msra.mxu0 %v702_v0  ;;  %v314_v3 = vld [vmem:[%s276_s1] sm:$0xff]  ;;  %v709_v4 = vld [vmem:[%s1153_s3 + $0x30] sm:$0xff]  ;;  %s698_s1 = sshll.u32 %s977_s8, 3  ;;  %s531_s19 = sshll.u32 %s312_s14, 4  ;;  %vm516_vm1 = vcmask 130048   ;;  %s532_s19 = int_to_ptr.vmem [resolvable:$true] %s531_s19 }
  0x32   : > { %421 = vmatpush.bf16.msra.mxu1 %v710_v1  ;;  %v315_v5 = vpack.c.bf16 %v314_v3, %v314_v3  ;;  %v708_v6 = vld [vmem:[%s1153_s3 + $0x28] sm:$0xff]  ;;  %v707_v7 = vld [vmem:[%s1153_s3 + $0x20] sm:$0xff]  ;;  %v706_v8 = vld [vmem:[%s1153_s3 + $0x18] sm:$0xff]  ;;  %s529_s13 = scalar_lea.hbm %s1157_s7, %s698_s1  ;;  %s519_s17 = scalar_lea.sflag [#allocation4], %s1044_s21 }
  0x33   : > { %v705_v9 = vld [vmem:[%s1153_s3 + $0x10] sm:$0xff]  ;;  %v704_v10 = vld [vmem:[%s1153_s3 + $0x8] sm:$0xff]  ;;  %v703_v11 = vld [vmem:[%s1153_s3] sm:$0xff]  ;;  %s533_s16 = sshll.u32 %s529_s13, 4  ;;  %s858_s12 = scalar_lea.hbm %s1157_s7, 16  ;;  %s534_s16 = int_to_ptr.hbm [resolvable:$true] %s533_s16 }
  0x34   : > { %v718_v12 = vld [vmem:[%s1155_s5 + $0x38] sm:$0xff]  ;;  %v717_v13 = vld [vmem:[%s1155_s5 + $0x30] sm:$0xff]  ;;  %v716_v14 = vld [vmem:[%s1155_s5 + $0x28] sm:$0xff]  ;;  %s852_s29 = sshra.s32 %s534_s16, 4  ;;  %s853_s29 = int_to_ptr.hbm [resolvable:$true] %s852_s29 }
  0x35   : > { %346 = vmatpush.bf16.msra.mxu0 %v701_v2  ;;  %503 = vmatpush.bf16.msra.mxu2 %v718_v12  ;;  %v715_v15 = vld [vmem:[%s1155_s5 + $0x20] sm:$0xff]  ;;  %v714_v17 = vld [vmem:[%s1155_s5 + $0x18] sm:$0xff]  ;;  %v713_v19 = vld [vmem:[%s1155_s5 + $0x10] sm:$0xff]  ;;  %s854_s8 = scalar_lea.hbm %s853_s29, 8  ;;  %p859_p12 = scmp.lt.s32.totalorder %s853_s29, %s1157_s7 }
  0x36   : > { %422 = vmatpush.bf16.msra.mxu1 %v709_v4  ;;  %v320_v16 = vld [vmem:[%s1152_s2] sm:$0x1]  ;;  %v712_v26 = vld [vmem:[%s1155_s5 + $0x8] sm:$0xff]  ;;  %p855_p1 = scmp.ne.s32.totalorder %s853_s29, %s854_s8  ;;  %p860_p8 = scmp.lt.s32.totalorder %s858_s12, %s854_s8 }
  0x37   : > { %v321_v18 = vunpack.c.l.bf16 %v320_v16  ;;  %v711_v27 = vld [vmem:[%s1155_s5] sm:$0xff] }
  0x38   : > { %632 = vmatmul.msk.bf16.vlgmr.msra.gmra.mxu0 %vm335_vm0, %v315_v5  ;;  %v370_v28 = vld [vmem:[%s1154_s4] sm:$0x1]  ;;  %p856_p3 = pnand %p855_p1, %p1013_p13  ;;  %p861_p7 = por %p860_p8, %p859_p12 }
  0x39   : > { %504 = vmatpush.bf16.msra.mxu2 %v717_v13  ;;  %v322_v20 = vperm.slane %v321_v18, 0  ;;  %v371_v29 = vunpack.c.l.bf16 %v370_v28  ;;  %v452_v36 = vld [vmem:[%s1156_s6] sm:$0x1] }
  0x3a   : > { %423 = vmatpush.bf16.msra.mxu1 %v708_v6  ;;  %v453_v37 = vunpack.c.l.bf16 %v452_v36  ;;  %p857_p5 = pneg %p856_p3 }
  0x3b   : > { %v372_v30 = vperm.slane %v371_v29, 0 }
  0x3c   : > { %v454_v38 = vperm.slane %v453_v37, 0  ;;  %p862_p9 = pnand %p861_p7, %p857_p5 }
  0x3d   : > { %505 = vmatpush.bf16.msra.mxu2 %v716_v14 }
  0x3e   : > { %424 = vmatpush.bf16.msra.mxu1 %v707_v7 }
  0x41   : > { %506 = vmatpush.bf16.msra.mxu2 %v715_v15 }
  0x42   : > { %425 = vmatpush.bf16.msra.mxu1 %v706_v8 }
  0x45   : > { %507 = vmatpush.bf16.msra.mxu2 %v714_v17 }
  0x46   : > { %426 = vmatpush.bf16.msra.mxu1 %v705_v9 }
  0x49   : > { %508 = vmatpush.bf16.msra.mxu2 %v713_v19 }
  0x4a   : > { %427 = vmatpush.bf16.msra.mxu1 %v704_v10 }
  0x4d   : > { %509 = vmatpush.bf16.msra.mxu2 %v712_v26 }
  0x4e   : > { %428 = vmatpush.bf16.msra.mxu1 %v703_v11 }
  0x51   : > { %510 = vmatpush.bf16.msra.mxu2 %v711_v27 }
  0xb5   : > { %v348_v21 = vpop.f32.mrf.mxu0 }
  0xb6   : > { %v349_v22 = vadd.f32 %v348_v21, %v322_v20 }
  0xb8   : > { %v352_v23 = vmax.f32 %v349_v22, 0.0 }
  0xba   : > { %v353_v24 = vpack.c.bf16 %v352_v23, %v352_v23 }
  0xbc   : > { %429 = vmatmul.bf16.vlgmr.msra.gmra.mxu1 %v353_v24 }
  0xbd   : > { %v350_v25 = vpop.f32.mrf.mxu0 }
 0x139   : > { %v430_v31 = vpop.f32.mrf.mxu1 }
 0x13a   : > { %v431_v32 = vadd.f32 %v430_v31, %v372_v30 }
 0x13c   : > { %v434_v33 = vmax.f32 %v431_v32, 0.0 }
 0x13e   : > { %v435_v34 = vpack.c.bf16 %v434_v33, %v434_v33 }
 0x140   : > { %511 = vmatmul.bf16.vlgmr.msra.gmra.mxu2 %v435_v34 }
 0x141   : > { %v432_v35 = vpop.f32.mrf.mxu1 }
 0x1c3   : > { %v512_v39 = vpop.f32.mrf.mxu2 }
 0x1c4   : > { %v513_v40 = vadd.f32 %v512_v39, %v454_v38 }
 0x1c6   : > { %517 = vst.msk [vmem:[%s312_s14] sm:$0xff] %vm516_vm1, %v513_v40 }
 0x1c7   : > { %865 = shalt.err (!%p862_p9)
}
 0x1c8   : > { %725 = dma.vmem_to_hbm [thread:$0]  (%p1013_p13), %s532_s19, 128, %s534_s16, %s519_s17  }
 0x1cb   : > { %v514_v41 = vpop.f32.mrf.mxu2 }
 0x1cc PF: > { %s545_s21 = sand.u32 1, %s896_s24   ;;  %p1165_p10 = scmp.ge.s32.totalorder %s908_s27, 2 }
 0x1cd   : > { %s546_s1 = scalar_lea.sflag [#allocation4], %s545_s21 }
 0x1ce   : > { %p736_p11 = pnand %p1165_p10, %p1018_p4 }
 0x1d0   : > { %p737_p0 = pneg %p736_p11 }
 0x1d2   : > { %891 = dma.done.wait (%p737_p0), %s546_s1, 128  }
 0x1d3   : > { %893 = vsyncadd (%p737_p0), %s546_s1, 4294967168  ;;  %p21_p2 = scmp.ge.s32.totalorder %s993_s15, 4   ;;  %s1166_s24 = smov %s900_s25 }
 0x1d4   : > { %s1167_s25 = smov %s904_s26  ;;  %s1168_s26 = smov %s1005_s18 }
 0x1d5   : > { %s1169_s27 = smov %s993_s15  ;;  %23 = sbr.rel (!%p21_p2) target bundleno = 8 (0x8), region = 97 }
 0x1da   :  { %552 = vsyncpa [#allocation3], 1 }
 0x1db   :  { %554 = vsyncpa [#allocation3 + $0x1], 1 }
 0x1dc   :  { %555 = vsyncpa [#allocation6], 1 }
 0x1dd   :  { %556 = vsyncpa [#allocation4], 1 }
 0x1de   :  { %558 = vsyncpa [#allocation4 + $0x1], 1 }

</bundles_post_ra>
